<compile_context>
chip_gen: v6e
topology: v6e:2x2x1
jax: 0.10.0
libtpu: 0.0.40
codegen_flags: <defaults>
</compile_context>

<pallas_src>
import jax
import jax.numpy as jnp
from jax.experimental import pallas as pl
from jax.experimental.pallas import tpu as pltpu


def _avg_height_kernel(x_ref, o_ref):
    # x_ref block: (Rb, D, Lb); o_ref block: (Rb, Lb)
    D = x_ref.shape[1]
    # One-shot load + cross-sublane reduction (XLU), then a single scale/store.
    s = jnp.sum(x_ref[...].astype(jnp.float32), axis=1)
    o_ref[...] = (s * jnp.float32(1.0 / D)).astype(o_ref.dtype)


def _choose_tiles(R, D, L, itemsize, target_bytes=2 * 1024 * 1024):
    """Pick (Rb, Lb) for a (Rb, D, Lb) input block.

    Invariants:
      * L is a multiple of 128 (wrapper pads), Lb is a multiple of 128.
      * Rb is a multiple of 8 or equal to R (output block tiling rule).
      * Rb * D * Lb * itemsize <= ~target_bytes (VMEM budget, double-buffered).
      * Grid has >= 2 steps on a parallel axis whenever the shape allows it
        (megacore / 2-TC sharding on v7x).
    """
    assert L % 128 == 0, "wrapper must pad L to a multiple of 128"

    Lb = min(L, 2048)
    # Shrink the lane tile first if even an 8-row slab would blow the budget
    # (e.g. huge D * H * W detection grids).
    while Lb > 128 and 8 * D * Lb * itemsize > target_bytes:
        Lb = max(128, (Lb // 2 // 128) * 128)

    rows = max(1, target_bytes // max(1, D * Lb * itemsize))
    if rows >= R:
        Rb = R
    else:
        Rb = min(R, max(8, (rows // 8) * 8))
        if Rb != R and Rb % 8 != 0:
            Rb = R

    # Megacore: never collapse to a single grid step if we can split.
    if pl.cdiv(R, Rb) * pl.cdiv(L, Lb) < 2:
        if L // 128 >= 2:
            Lb = pl.cdiv(L // 128, 2) * 128          # ~half of L, multiple of 128
        elif R > 8:
            Rb = min(R, max(8, (pl.cdiv(R, 2) // 8) * 8))

    # Hard VMEM cap (block is double-buffered by the pipeline).
    assert Rb * D * Lb * itemsize <= 8 * 1024 * 1024, (
        "input block too large for VMEM budget"
    )
    return Rb, Lb


def average_height_compression(dense_features: jax.Array) -> jax.Array:
    """dense_features: (N, C, D, H, W) -> (N, C, H, W) via mean over D."""
    N, C, D, H, W = dense_features.shape
    R, L = N * C, H * W
    itemsize = jnp.dtype(dense_features.dtype).itemsize

    # Free reshape for contiguous row-major NCDHW: (N*C, D, H*W).
    x = dense_features.reshape(R, D, L)

    # Pad the lane axis to a multiple of 128 so every output store is an
    # unmasked full-width vst (padded lanes are sliced off afterwards).
    L_pad = pl.cdiv(L, 128) * 128
    if L_pad != L:
        x = jnp.pad(x, ((0, 0), (0, 0), (0, L_pad - L)))

    Rb, Lb = _choose_tiles(R, D, L_pad, itemsize)
    grid = (pl.cdiv(R, Rb), pl.cdiv(L_pad, Lb))

    cost = pl.CostEstimate(
        flops=R * L_pad * D,
        transcendentals=0,
        bytes_accessed=R * D * L_pad * itemsize + R * L_pad * itemsize,
    )

    out_flat = pl.pallas_call(
        _avg_height_kernel,
        out_shape=jax.ShapeDtypeStruct((R, L_pad), dense_features.dtype),
        grid_spec=pltpu.PrefetchScalarGridSpec(
            num_scalar_prefetch=0,
            grid=grid,
            in_specs=[
                pl.BlockSpec((Rb, D, Lb), lambda i, j: (i, 0, j)),
            ],
            out_specs=pl.BlockSpec((Rb, Lb), lambda i, j: (i, j)),
        ),
        compiler_params=pltpu.CompilerParams(
            dimension_semantics=("parallel", "parallel"),
        ),
        cost_estimate=cost,
    )(x)

    if L_pad != L:
        out_flat = out_flat[:, :L]
    return out_flat.reshape(N, C, H, W)


def sparse_to_dense(indices, features, shape):
    """Glue emulating spconv's .dense(): scatter voxel features directly into a
    dense NCDHW grid (no full-tensor transpose afterwards).
    indices: (M, 4) = [batch, d, h, w]; features: (M, C)."""
    N, C, D, H, W = shape
    dense = jnp.zeros((N, C, D, H, W), dtype=features.dtype)
    # TODO(synk): duplicate voxel indices are last-write-wins (.set), matching
    # spconv .dense() only when indices are unique.
    # TODO(synk): end-to-end, densify+mean could be fused into a scatter-add
    # into an (N, C, H, W) accumulator scaled by 1/D, skipping the dense D
    # volume entirely; kept separate here to preserve module semantics.
    dense = dense.at[
        indices[:, 0], :, indices[:, 1], indices[:, 2], indices[:, 3]
    ].set(features)
    return dense


if __name__ == "__main__":
    # Small shapes: N=2, C=4, D=8, H=16, W=16
    N, C, D, H, W = 2, 4, 8, 16, 16
    M = 64  # number of active voxels

    key = jax.random.PRNGKey(0)
    k_idx, k_feat = jax.random.split(key)

    # Deterministic synthetic sparse tensor (indices may collide; .set is fine).
    b_idx = jax.random.randint(k_idx, (M, 1), 0, N)
    d_idx = jax.random.randint(jax.random.fold_in(k_idx, 1), (M, 1), 0, D)
    h_idx = jax.random.randint(jax.random.fold_in(k_idx, 2), (M, 1), 0, H)
    w_idx = jax.random.randint(jax.random.fold_in(k_idx, 3), (M, 1), 0, W)
    indices = jnp.concatenate([b_idx, d_idx, h_idx, w_idx], axis=1)
    features = jax.random.normal(k_feat, (M, C), dtype=jnp.float32)

    dense = sparse_to_dense(indices, features, (N, C, D, H, W))  # (2,4,8,16,16)

    out = average_height_compression(dense)
    out = jax.block_until_ready(out)

    # Reference check against plain JAX mean over D.
    ref = jnp.mean(dense, axis=2)
    assert out.shape == (N, C, H, W), out.shape
    assert jnp.allclose(out, ref, atol=1e-5, rtol=1e-5), float(
        jnp.max(jnp.abs(out - ref))
    )

    print("KERNEL_OK")
</pallas_src>

<mosaic_0001>
module attributes {stable_mosaic.version = 11 : i64} {
  func.func @_avg_height_kernel(%arg0: i32, %arg1: i32, %arg2: memref<8x8x128xf32, #tpu.memory_space<vmem>>, %arg3: memref<8x128xf32, #tpu.memory_space<vmem>>) attributes {dimension_semantics = [#tpu.dimension_semantics<parallel>, #tpu.dimension_semantics<parallel>], iteration_bounds = array<i64: 1, 2>, scalar_prefetch = 0 : i64, scratch_operands = 0 : i64, tpu.core_type = #tpu.core_type<tc>, window_params = [{transform_indices = @transform_0, window_bounds = array<i64: 8, 8, 128>}, {transform_indices = @transform_1, window_bounds = array<i64: 8, 128>}]} {
    %c0 = arith.constant 0 : index
    %c0_0 = arith.constant 0 : index
    %c0_1 = arith.constant 0 : index
    %0 = vector.load %arg2[%c0, %c0_0, %c0_1] : memref<8x8x128xf32, #tpu.memory_space<vmem>>, vector<8x8x128xf32>
    %cst = arith.constant dense<0.000000e+00> : vector<8x128xf32>
    %1 = vector.multi_reduction <add>, %0, %cst [1] : vector<8x8x128xf32> to vector<8x128xf32>
    %cst_2 = arith.constant 1.250000e-01 : f32
    %2 = vector.broadcast %cst_2 : f32 to vector<8x128xf32>
    %3 = arith.mulf %1, %2 : vector<8x128xf32>
    %c0_3 = arith.constant 0 : index
    %c0_4 = arith.constant 0 : index
    %4 = vector.load %arg3[%c0_3, %c0_4] : memref<8x128xf32, #tpu.memory_space<vmem>>, vector<8x128xf32>
    tpu.vector_store %arg3[%c0_3, %c0_4], %3 {strides = array<i32>} : memref<8x128xf32, #tpu.memory_space<vmem>>, vector<8x128xf32>,
    return
  }
  func.func @transform_0(%arg0: i32, %arg1: i32) -> (i32, i32, i32) {
    %c0_i32 = arith.constant 0 : i32
    %c0_i32_0 = arith.constant 0 : i32
    return %arg0, %c0_i32, %arg1 : i32, i32, i32
  }
  func.func @transform_1(%arg0: i32, %arg1: i32) -> (i32, i32) {
    %c0_i32 = arith.constant 0 : i32
    return %arg0, %arg1 : i32, i32
  }
}

</mosaic_0001>

<bundles_post_ra>
// kernel: tpu_custom_call.1
= control target key start
LH: loop header
LB: loop body
LE: loop exit
PB: predicated region body
PF: predicated region fallthrough
CT: control target
= control target key end

     0   :  { %6 = vsyncpa [#allocation3], 0  ;;  %s682_s0 = inlined_call_operand.hbm [shape: f32[8,8,256], index: 0, kind: input, shape index: {}]   ;;  %s683_s1 = inlined_call_operand.hbm [shape: f32[8,256], index: 1, kind: output, shape index: {}]  }
   0x1   :  { %8 = vsyncpa [#allocation3 + $0x1], 0 }
   0x2   :  { %9 = vsyncpa [#allocation4], 0 }
   0x3   :  { %11 = vsyncpa [#allocation4 + $0x1], 0  ;;  %s543_s6 = smov 0   ;;  %s545_s7 = smov 0  }
   0x4   :  { %s547_s8 = smov 0   ;;  %s549_s9 = smov 0  }
   0x5   :  { %s551_s10 = smov 0   ;;  %s553_s11 = smov 0  }
   0x6 LB: > { %s340_s12 = sadd.s32 4294967295, %s526_s11   ;;  %s341_s13 = sadd.s32 4294967294, %s526_s11   ;;  %s526_s11 = sphi %s553_s11, %s17_s11   ;;  %s522_s10 = sphi %s551_s10, %s694_s10   ;;  %s518_s9 = sphi %s549_s9, %s693_s9   ;;  %s514_s8 = sphi %s547_s8, %s692_s8   ;;  %s510_s7 = sphi %s545_s7, %s691_s7   ;;  %s506_s6 = sphi %s543_s6, %s690_s6  }
   0x7   : > { %s26_s14 = sadd.s32 1, %s522_s10  ;;  %s38_s15 = sadd.s32 1, %s514_s8 }
   0x8   : > { %p27_p0 = scmp.ge.s32.totalorder %s26_s14, 2  ;;  %p45_p1 = scmp.ne.s32.totalorder %s514_s8, %s510_s7 }
   0x9   : > { %p46_p2 = scmp.eq.s32.totalorder %s526_s11, 0  ;;  %p51_p3 = scmp.ne.s32.totalorder %s510_s7, %s506_s6 }
   0xa   : > { %s696_s14 = smov (%p27_p0, %s26_s14), 0  ;;  %p52_p5 = scmp.eq.s32.totalorder %s340_s12, 0 }
   0xb   : > { %p584_p4 = por %p46_p2, %p45_p1  ;;  %s34_s17 = ssub.s32 %s522_s10, %s696_s14 }
   0xc   : > { %p77_p6 = scmp.eq.s32.totalorder %s340_s12, 1  ;;  %p36_p7 = scmp.eq.s32.totalorder %s34_s17, 0 }
   0xd   : > { %p590_p8 = por %p52_p5, %p51_p3  ;;  %p83_p10 = scmp.eq.s32.totalorder %s341_s13, 1 }
   0xe   : > { %p594_p9 = por %p77_p6, %p45_p1  ;;  %p365_p13 = scmp.lt.s32.totalorder %s526_s11, 2 }
   0xf   : > { %s599_s20 = scalar_select %p36_p7, %s514_s8, %s38_s15  }
  0x10   : > { %p601_p11 = por %p83_p10, %p51_p3  ;;  %s103_s22 = sand.u32 1, %s514_s8  }
  0x11   : > { %s344_s23 = sshll.u32 %s103_s22, 6  ;;  %s345_s24 = sshll.u32 %s522_s10, 7 }
  0x12   : > { %s115_s27 = scalar_lea.hbm %s682_s0, %s345_s24  ;;  %s107_s28 = scalar_lea.vmem [#allocation2], %s344_s23 }
  0x13   : > { %s116_s29 = sshll.u32 %s107_s28, 4  ;;  %p614_p0 = pnand %p365_p13, %p584_p4  ;;  %s117_s29 = int_to_ptr.vmem [resolvable:$true] %s116_s29 }
  0x14   : > { %s104_s2 = scalar_lea.sflag [#allocation3], %s103_s22  ;;  %s431_s3 = scalar_lea.vmem %s117_s29, 1024 }
  0x15   : > { %p420_p1 = pneg %p614_p0  ;;  %p432_p2 = scmp.ne.s32.totalorder %s117_s29, %s431_s3 }
  0x16   : > { %s528_s4 = smov [#allocation2]  }
  0x17   : > { %p434_p3 = pnand %p432_p2, %p420_p1  ;;  %s436_s5 = sshll.u32 %s528_s4, 4  ;;  %s437_s5 = int_to_ptr.vmem [resolvable:$false] %s436_s5 }
  0x18   : > { %s438_s12 = scalar_lea.vmem %s437_s5, 2048  ;;  %p439_p6 = scmp.lt.s32.totalorder %s117_s29, %s437_s5 }
  0x19   : > { %p435_p5 = pneg %p434_p3  ;;  %p440_p7 = scmp.lt.s32.totalorder %s438_s12, %s431_s3 }
  0x1b   : > { %p441_p10 = por %p440_p7, %p439_p6 }
  0x1d   : > { %p442_p12 = pnand %p441_p10, %p435_p5 }
  0x1f   : > { %445 = shalt.err (!%p442_p12)
}
  0x20   : > { %s529_s13 = smov 256   ;;  %s530_s15 = smov 128  }
  0x21   : > { %s531_s16 = smov 8   ;;  %p346_p4 = scmp.ge.s32.totalorder %s526_s11, 1 }
  0x22   : > { %360 = dma.hbm_to_vmem [thread:$0]  (!%p614_p0), %s115_s27, 1024, %s117_s29, %s104_s2, %s529_s13, %s530_s15, %s531_s16  }
  0x23   : > { %p124_p13 = scmp.lt.s32.totalorder %s526_s11, 3 }
  0x25   : > { %p125_p1 = pnand %p346_p4, %p124_p13 }
  0x26   : > { %s625_s17 = sand.u32 (!%p125_p1), 1, %s510_s7  }
  0x27   : > { %128 = sbr.rel (%p125_p1) target bundleno = 80 (0x50), region = 24  ;;  %s347_s22 = sshll.u32 (!%p125_p1), %s625_s17, 6 }
  0x28   : > { %s131_s23 = scalar_lea.sflag (!%p125_p1), [#allocation3], %s625_s17  ;;  %s134_s24 = scalar_lea.vmem (!%p125_p1), [#allocation2], %s347_s22 }
  0x2c   : > { %497 = dma.done.wait (%p590_p8), %s131_s23, 1024  }
  0x2d   : > { %499 = vsyncadd (%p590_p8), %s131_s23, 4294966272  ;;  %v154_v0 = vld [vmem:[%s134_s24] sm:$0xff]  ;;  %v155_v1 = vld [vmem:[%s134_s24 + $0x8] sm:$0xff]  ;;  %vm226_vm0 = vcmask 1041409   ;;  %vm228_vm1 = vcmask 1042434   ;;  %s348_s18 = sshll.u32 %s625_s17, 3 }
  0x2e   : > { %v156_v2 = vld [vmem:[%s134_s24 + $0x10] sm:$0xff]  ;;  %v157_v3 = vld [vmem:[%s134_s24 + $0x18] sm:$0xff]  ;;  %v158_v4 = vld [vmem:[%s134_s24 + $0x20] sm:$0xff]  ;;  %v162_v6 = vrot.slane %v154_v0, 4  ;;  %v168_v7 = vrot.slane %v155_v1, 4  ;;  %vm230_vm2 = vcmask 1043459  }
  0x2f   : > { %v159_v5 = vld [vmem:[%s134_s24 + $0x28] sm:$0xff]  ;;  %v174_v8 = vrot.slane %v156_v2, 4  ;;  %v160_v9 = vld [vmem:[%s134_s24 + $0x30] sm:$0xff]  ;;  %v161_v10 = vld [vmem:[%s134_s24 + $0x38] sm:$0xff]  ;;  %v180_v11 = vrot.slane %v157_v3, 4  ;;  %v186_v12 = vrot.slane %v158_v4, 4 }
  0x30   : > { %v192_v13 = vrot.slane %v159_v5, 4  ;;  %v163_v14 = vadd.f32 %v162_v6, %v154_v0  ;;  %v169_v15 = vadd.f32 %v168_v7, %v155_v1  ;;  %v198_v17 = vrot.slane %v160_v9, 4  ;;  %s152_s25 = scalar_lea.vmem [#allocation5], %s348_s18  ;;  %s350_s27 = sshll.u32 %s518_s9, 7 }
  0x31   : > { %v175_v16 = vadd.f32 %v174_v8, %v156_v2  ;;  %v181_v18 = vadd.f32 %v180_v11, %v157_v3  ;;  %v187_v19 = vadd.f32 %v186_v12, %v158_v4  ;;  %v204_v21 = vrot.slane %v161_v10, 4  ;;  %s258_s26 = sshll.u32 %s152_s25, 4  ;;  %s256_s30 = scalar_lea.hbm %s683_s1, %s350_s27  ;;  %s637_s26 = int_to_ptr.vmem [resolvable:$true] %s258_s26 }
  0x32   : > { %v193_v20 = vadd.f32 %v192_v13, %v159_v5  ;;  %v164_v22 = vrot.slane %v163_v14, 2  ;;  %v170_v23 = vrot.slane %v169_v15, 2  ;;  %v199_v25 = vadd.f32 %v198_v17, %v160_v9  ;;  %s243_s2 = scalar_lea.sflag [#allocation4], %s625_s17  ;;  %s446_s3 = scalar_lea.vmem %s637_s26, 128 }
  0x33   : > { %v176_v24 = vrot.slane %v175_v16, 2  ;;  %v182_v26 = vrot.slane %v181_v18, 2  ;;  %v188_v27 = vrot.slane %v187_v19, 2  ;;  %v205_v29 = vadd.f32 %v204_v21, %v161_v10  ;;  %p447_p8 = scmp.ne.s32.totalorder %s637_s26, %s446_s3  ;;  %s532_s9 = smov [#allocation5]  }
  0x34   : > { %v194_v28 = vrot.slane %v193_v20, 2  ;;  %v165_v30 = vadd.f32 %v164_v22, %v163_v14  ;;  %v171_v31 = vadd.f32 %v170_v23, %v169_v15  ;;  %v200_v33 = vrot.slane %v199_v25, 2  ;;  %s450_s4 = sshll.u32 %s532_s9, 4  ;;  %s451_s4 = int_to_ptr.vmem [resolvable:$false] %s450_s4 }
  0x35   : > { %v177_v32 = vadd.f32 %v176_v24, %v175_v16  ;;  %v183_v34 = vadd.f32 %v182_v26, %v181_v18  ;;  %v189_v35 = vadd.f32 %v188_v27, %v187_v19  ;;  %v206_v37 = vrot.slane %v205_v29, 2  ;;  %p448_p12 = pnand %p447_p8, %p594_p9  ;;  %s452_s5 = scalar_lea.vmem %s451_s4, 256 }
  0x36   : > { %v195_v36 = vadd.f32 %v194_v28, %v193_v20  ;;  %v166_v38 = vrot.slane %v165_v30, 1  ;;  %v172_v39 = vrot.slane %v171_v31, 1  ;;  %v201_v41 = vadd.f32 %v200_v33, %v199_v25  ;;  %p453_p2 = scmp.lt.s32.totalorder %s637_s26, %s451_s4  ;;  %p454_p3 = scmp.lt.s32.totalorder %s452_s5, %s446_s3 }
  0x37   : > { %v178_v40 = vrot.slane %v177_v32, 1  ;;  %v184_v42 = vrot.slane %v183_v34, 1  ;;  %v190_v43 = vrot.slane %v189_v35, 1  ;;  %v207_v45 = vadd.f32 %v206_v37, %v205_v29  ;;  %p449_p0 = pneg %p448_p12 }
  0x38   : > { %v196_v44 = vrot.slane %v195_v36, 1  ;;  %v167_v46 = vadd.f32 %v166_v38, %v165_v30  ;;  %v173_v47 = vadd.f32 %v172_v39, %v171_v31  ;;  %v202_v49 = vrot.slane %v201_v41, 1  ;;  %p455_p5 = por %p454_p3, %p453_p2 }
  0x39   : > { %v179_v48 = vadd.f32 %v178_v40, %v177_v32  ;;  %v185_v50 = vadd.f32 %v184_v42, %v183_v34  ;;  %v191_v51 = vadd.f32 %v190_v43, %v189_v35  ;;  %v208_v53 = vrot.slane %v207_v45, 1 }
  0x3a   : > { %v197_v52 = vadd.f32 %v196_v44, %v195_v36  ;;  %v203_v54 = vadd.f32 %v202_v49, %v201_v41  ;;  %v210_v55 = vmul.f32 0.125, %v167_v46  ;;  %v211_v56 = vmul.f32 0.125, %v173_v47  ;;  %p456_p6 = pnand %p455_p5, %p449_p0 }
  0x3b   : > { %v212_v57 = vmul.f32 0.125, %v179_v48  ;;  %v209_v58 = vadd.f32 %v208_v53, %v207_v45  ;;  %v213_v59 = vmul.f32 0.125, %v185_v50  ;;  %v214_v60 = vmul.f32 0.125, %v191_v51 }
  0x3c   : > { %v215_v61 = vmul.f32 0.125, %v197_v52  ;;  %v227_v62 = vsel %vm226_vm0, %v211_v56, %v210_v55  ;;  %vm232_vm3 = vcmask 1044484   ;;  %v216_v63 = vmul.f32 0.125, %v203_v54 }
  0x3d   : > { %v229_v0 = vsel %vm228_vm1, %v212_v57, %v227_v62  ;;  %vm234_vm4 = vcmask 1045509   ;;  %v217_v1 = vmul.f32 0.125, %v209_v58  ;;  %vm236_vm5 = vcmask 1046534  }
  0x3e   : > { %v231_v2 = vsel %vm230_vm2, %v213_v59, %v229_v0  ;;  %vm238_vm6 = vcmask 1047559  }
  0x3f   : > { %v233_v3 = vsel %vm232_vm3, %v214_v60, %v231_v2 }
  0x40   : > { %v235_v4 = vsel %vm234_vm4, %v215_v61, %v233_v3 }
  0x41   : > { %v237_v5 = vsel %vm236_vm5, %v216_v63, %v235_v4 }
  0x42   : > { %v239_v6 = vsel %vm238_vm6, %v217_v1, %v237_v5 }
  0x43   : > { %241 = vst [vmem:[%s152_s25] sm:$0xff] %v239_v6 }
  0x44   : > { %459 = shalt.err (!%p456_p6)
}
  0x45   : > { %s460_s12 = scalar_lea.hbm %s256_s30, 128  ;;  %s464_s16 = scalar_lea.hbm %s683_s1, 256 }
  0x46   : > { %p461_p7 = scmp.ne.s32.totalorder %s256_s30, %s460_s12  ;;  %p465_p13 = scmp.lt.s32.totalorder %s256_s30, %s683_s1 }
  0x47   : > { %p466_p1 = scmp.lt.s32.totalorder %s464_s16, %s460_s12 }
  0x48   : > { %p462_p10 = pnand %p461_p7, %p594_p9 }
  0x49   : > { %p467_p8 = por %p466_p1, %p465_p13 }
  0x4a   : > { %p463_p4 = pneg %p462_p10 }
  0x4c   : > { %p468_p12 = pnand %p467_p8, %p463_p4 }
  0x4e   : > { %471 = shalt.err (!%p468_p12)
}
  0x4f   : > { %355 = dma.vmem_to_hbm [thread:$0]  (%p594_p9), %s637_s26, 128, %s256_s30, %s243_s2  }
  0x50 PF: > { %s270_s23 = sand.u32 1, %s506_s6   ;;  %p689_p0 = scmp.ge.s32.totalorder %s526_s11, 2 }
  0x51   : > { %s271_s24 = scalar_lea.sflag [#allocation4], %s270_s23 }
  0x52   : > { %p362_p2 = pnand %p689_p0, %p601_p11 }
  0x54   : > { %p363_p3 = pneg %p362_p2 }
  0x56   : > { %501 = dma.done.wait (%p363_p3), %s271_s24, 128  }
  0x57   : > { %503 = vsyncadd (%p363_p3), %s271_s24, 4294967168  ;;  %s17_s11 = sadd.s32 1, %s526_s11   ;;  %s690_s6 = smov %s510_s7 }
  0x58   : > { %p14_p5 = scmp.ge.s32.totalorder %s17_s11, 4   ;;  %s691_s7 = smov %s514_s8 }
  0x59   : > { %s692_s8 = smov %s599_s20  ;;  %s693_s9 = smov %s522_s10 }
  0x5a   : > { %s694_s10 = smov %s696_s14  ;;  %16 = sbr.rel (!%p14_p5) target bundleno = 6 (0x6), region = 69 }
  0x5f   :  { %276 = vsyncpa [#allocation3], 1 }
  0x60   :  { %278 = vsyncpa [#allocation3 + $0x1], 1 }
  0x61   :  { %279 = vsyncpa [#allocation4], 1 }
  0x62   :  { %281 = vsyncpa [#allocation4 + $0x1], 1 }

</bundles_post_ra>
